<compile_context>
chip_gen: v5e
topology: v5e:2x2
jax: 0.10.0
libtpu: 0.0.40
codegen_flags: <defaults>
</compile_context>

<pallas_src>
import jax
import jax.numpy as jnp
from jax import lax
from jax.experimental import pallas as pl
from jax.experimental.pallas import tpu as pltpu


def actor_kernel(obs_ref, u_ref, w1_ref, b1_ref, w2_ref, b2_ref,
                 act_ref, logp_ref):
    # obs_ref: [TB, d_in] (natural layout, no host transpose).
    # Everything downstream is transposed: batch lives on the LANE axis.

    # --- layer 1: h_T = relu(W1 @ obs_T + b1), via trans_b dot_general ---
    h = lax.dot_general(
        w1_ref[...], obs_ref[...],
        dimension_numbers=(((1,), (1,)), ((), ())),     # contract d_in with d_in
        preferred_element_type=jnp.float32) + b1_ref[...]        # [H, TB]
    h = jnp.maximum(h, 0.0)

    # --- layer 2: logits_T = W2 @ h_T + b2 ---
    logits = jnp.dot(w2_ref[...], h,
                     preferred_element_type=jnp.float32) + b2_ref[...]  # [O, TB]

    # --- softmax pieces over the action axis (sublanes, axis 0) ---
    m = jnp.max(logits, axis=0, keepdims=True)          # [1, TB]
    z = logits - m                                      # [O, TB], <= 0
    e = jnp.exp(z)                                      # [O, TB]
    denom = jnp.sum(e, axis=0, keepdims=True)           # [1, TB], >= 1

    # --- Categorical.sample() by inverse CDF: one uniform per batch element.
    #     action = #{k : u * denom >= cumsum_k(e)}  (unrolled, O is tiny) ---
    n_out = logits.shape[0]
    thresh = u_ref[...] * denom                         # [1, TB]
    run = jnp.zeros_like(denom)
    count = jnp.zeros(denom.shape, jnp.int32)
    for k in range(n_out):                              # static unroll (O = 4)
        run = run + e[k:k + 1, :]
        count = count + (thresh >= run).astype(jnp.int32)
    idx = jnp.minimum(count, n_out - 1)                 # [1, TB] int32, in range

    # --- Categorical.log_prob(action) = z[action] - log(denom) ---
    iota = lax.broadcasted_iota(jnp.int32, logits.shape, 0)
    z_at = jnp.sum(jnp.where(iota == idx, z, 0.0), axis=0, keepdims=True)
    logp = z_at - jnp.log(denom)                        # [1, TB]

    act_ref[...] = idx
    logp_ref[...] = logp


def init_actor_params(key, input_size, output_size, hidden_dim):
    """PyTorch-style layout ([out_features, in_features]) and default init."""
    k1, k2, k3, k4 = jax.random.split(key, 4)
    lim1 = 1.0 / jnp.sqrt(jnp.float32(input_size))
    lim2 = 1.0 / jnp.sqrt(jnp.float32(hidden_dim))
    return {
        "w1": jax.random.uniform(k1, (hidden_dim, input_size),
                                 jnp.float32, -lim1, lim1),
        "b1": jax.random.uniform(k2, (hidden_dim, 1), jnp.float32, -lim1, lim1),
        "w2": jax.random.uniform(k3, (output_size, hidden_dim),
                                 jnp.float32, -lim2, lim2),
        "b2": jax.random.uniform(k4, (output_size, 1), jnp.float32, -lim2, lim2),
    }


def _round_up(x, m):
    return ((x + m - 1) // m) * m


def actor_forward(obs, params, sample_key, *, batch_tile=4096):
    """Returns (action_index int32 [B], log_prob f32 [B])."""
    B, d_in = obs.shape
    H = params["w1"].shape[0]
    O = params["w2"].shape[0]

    # Batch tile: big enough to amortize ~600-cycle per-step overhead, multiple
    # of 256 for the MXU N-dim, and split into >=2 grid steps when the batch
    # allows so v7x's two TensorCores both get work.
    batch_tile = max(256, _round_up(batch_tile, 256))
    full = _round_up(B, 256)
    if full >= 512:
        TB = min(batch_tile, _round_up(-(-B // 2), 256))
    else:
        TB = full
    num_tiles = pl.cdiv(B, TB)
    B_pad = num_tiles * TB

    # Only pad the ragged tail (no transpose, no full-array rewrite when B
    # is already a multiple of TB).
    if B_pad != B:
        obs = jnp.pad(obs, ((0, B_pad - B), (0, 0)))

    # One uniform per batch element, generated outside the kernel (the stateful
    # hardware PRNG has no interpret/CPU lowering).  Lane-dense [1, B_pad].
    u = jax.random.uniform(sample_key, (1, B_pad), dtype=jnp.float32)

    act, logp = pl.pallas_call(
        actor_kernel,
        grid=(num_tiles,),
        in_specs=[
            pl.BlockSpec((TB, d_in), lambda i: (i, 0)),   # obs tile (natural layout)
            pl.BlockSpec((1, TB),    lambda i: (0, i)),   # uniforms (lane-dense)
            pl.BlockSpec((H, d_in),  lambda i: (0, 0)),   # w1 (VMEM-resident)
            pl.BlockSpec((H, 1),     lambda i: (0, 0)),   # b1
            pl.BlockSpec((O, H),     lambda i: (0, 0)),   # w2
            pl.BlockSpec((O, 1),     lambda i: (0, 0)),   # b2
        ],
        out_specs=(
            pl.BlockSpec((1, TB), lambda i: (0, i)),      # action (lane-dense)
            pl.BlockSpec((1, TB), lambda i: (0, i)),      # log_prob (lane-dense)
        ),
        out_shape=(
            jax.ShapeDtypeStruct((1, B_pad), jnp.int32),
            jax.ShapeDtypeStruct((1, B_pad), jnp.float32),
        ),
        compiler_params=pltpu.CompilerParams(
            dimension_semantics=("parallel",)),
        # NOTE: at these sizes VMEM use is < 2 MB/step; for much larger TB or
        # model dims, set vmem_limit_bytes here (smaller ceiling on v7x/v5e).
    )(obs, u, params["w1"], params["b1"], params["w2"], params["b2"])

    return act[0, :B], logp[0, :B]


if __name__ == "__main__":
    # Small shapes consistent with the module: obs [B, input_size]
    B, INPUT_SIZE, OUTPUT_SIZE, HIDDEN_DIM = 8, 16, 4, 32

    root = jax.random.PRNGKey(0)
    k_param, k_obs, k_sample = jax.random.split(root, 3)

    params = init_actor_params(k_param, INPUT_SIZE, OUTPUT_SIZE, HIDDEN_DIM)
    obs = jax.random.normal(k_obs, (B, INPUT_SIZE), dtype=jnp.float32)

    action_index, log_prob = actor_forward(obs, params, k_sample)
    jax.block_until_ready((action_index, log_prob))

    # Sanity: actions in range, log_probs finite and (numerically) <= 0
    assert action_index.dtype == jnp.int32 and action_index.shape == (B,)
    assert bool(jnp.all((action_index >= 0) & (action_index < OUTPUT_SIZE)))
    assert bool(jnp.all(jnp.isfinite(log_prob)))
    assert bool(jnp.all(log_prob <= 1e-4))

    print("KERNEL_OK")
</pallas_src>

<mosaic_0001>
module attributes {stable_mosaic.version = 11 : i64} {
  func.func @actor_kernel(%arg0: i32, %arg1: memref<256x16xf32, #tpu.memory_space<vmem>>, %arg2: memref<1x256xf32, #tpu.memory_space<vmem>>, %arg3: memref<32x16xf32, #tpu.memory_space<vmem>>, %arg4: memref<32x1xf32, #tpu.memory_space<vmem>>, %arg5: memref<4x32xf32, #tpu.memory_space<vmem>>, %arg6: memref<4x1xf32, #tpu.memory_space<vmem>>, %arg7: memref<1x256xi32, #tpu.memory_space<vmem>>, %arg8: memref<1x256xf32, #tpu.memory_space<vmem>>) attributes {dimension_semantics = [#tpu.dimension_semantics<parallel>], iteration_bounds = array<i64: 1>, scalar_prefetch = 0 : i64, scratch_operands = 0 : i64, tpu.core_type = #tpu.core_type<tc>, window_params = [{transform_indices = @transform_0, window_bounds = array<i64: 256, 16>}, {transform_indices = @transform_1, window_bounds = array<i64: 1, 256>}, {pipeline_mode = #tpu.pipeline_mode<synchronous>, transform_indices = @transform_2, window_bounds = array<i64: 32, 16>}, {pipeline_mode = #tpu.pipeline_mode<synchronous>, transform_indices = @transform_3, window_bounds = array<i64: 32, 1>}, {pipeline_mode = #tpu.pipeline_mode<synchronous>, transform_indices = @transform_4, window_bounds = array<i64: 4, 32>}, {pipeline_mode = #tpu.pipeline_mode<synchronous>, transform_indices = @transform_5, window_bounds = array<i64: 4, 1>}, {transform_indices = @transform_6, window_bounds = array<i64: 1, 256>}, {transform_indices = @transform_7, window_bounds = array<i64: 1, 256>}]} {
    %c0 = arith.constant 0 : index
    %c0_0 = arith.constant 0 : index
    %0 = vector.load %arg3[%c0, %c0_0] : memref<32x16xf32, #tpu.memory_space<vmem>>, vector<32x16xf32>
    %c0_1 = arith.constant 0 : index
    %c0_2 = arith.constant 0 : index
    %1 = vector.load %arg1[%c0_1, %c0_2] : memref<256x16xf32, #tpu.memory_space<vmem>>, vector<256x16xf32>
    %cst = arith.constant dense<0.000000e+00> : vector<32x256xf32>
    %2 = tpu.matmul %0, %1, %cst {dimension_numbers = #tpu.dot_dimension_numbers<[1], [1], [0], [0], [0, 0, 1, 0], [], []>} : vector<32x16xf32>, vector<256x16xf32>, vector<32x256xf32> -> vector<32x256xf32>
    %c0_3 = arith.constant 0 : index
    %c0_4 = arith.constant 0 : index
    %3 = vector.load %arg4[%c0_3, %c0_4] : memref<32x1xf32, #tpu.memory_space<vmem>>, vector<32x1xf32>
    %4 = vector.broadcast %3 : vector<32x1xf32> to vector<32x256xf32>
    %5 = arith.addf %2, %4 : vector<32x256xf32>
    %cst_5 = arith.constant 0.000000e+00 : f32
    %6 = vector.broadcast %cst_5 : f32 to vector<32x256xf32>
    %7 = arith.maximumf %5, %6 : vector<32x256xf32>
    %c0_6 = arith.constant 0 : index
    %c0_7 = arith.constant 0 : index
    %8 = vector.load %arg5[%c0_6, %c0_7] : memref<4x32xf32, #tpu.memory_space<vmem>>, vector<4x32xf32>
    %cst_8 = arith.constant dense<0.000000e+00> : vector<4x256xf32>
    %9 = tpu.matmul %8, %7, %cst_8 {dimension_numbers = #tpu.dot_dimension_numbers<[1], [0], [0], [1], [0, 0, 1, 1], [], []>} : vector<4x32xf32>, vector<32x256xf32>, vector<4x256xf32> -> vector<4x256xf32>
    %c0_9 = arith.constant 0 : index
    %c0_10 = arith.constant 0 : index
    %10 = vector.load %arg6[%c0_9, %c0_10] : memref<4x1xf32, #tpu.memory_space<vmem>>, vector<4x1xf32>
    %11 = vector.broadcast %10 : vector<4x1xf32> to vector<4x256xf32>
    %12 = arith.addf %9, %11 : vector<4x256xf32>
    %cst_11 = arith.constant dense<0xFF800000> : vector<256xf32>
    %13 = vector.multi_reduction <maximumf>, %12, %cst_11 [0] : vector<4x256xf32> to vector<256xf32>
    %14 = vector.shape_cast %13 : vector<256xf32> to vector<1x256xf32>
    %15 = vector.broadcast %14 : vector<1x256xf32> to vector<4x256xf32>
    %16 = arith.subf %12, %15 : vector<4x256xf32>
    %17 = math.exp %16 : vector<4x256xf32>
    %cst_12 = arith.constant dense<0.000000e+00> : vector<256xf32>
    %18 = vector.multi_reduction <add>, %17, %cst_12 [0] : vector<4x256xf32> to vector<256xf32>
    %19 = vector.shape_cast %18 : vector<256xf32> to vector<1x256xf32>
    %c0_13 = arith.constant 0 : index
    %c0_14 = arith.constant 0 : index
    %20 = vector.load %arg2[%c0_13, %c0_14] : memref<1x256xf32, #tpu.memory_space<vmem>>, vector<1x256xf32>
    %21 = arith.mulf %20, %19 : vector<1x256xf32>
    %cst_15 = arith.constant 0.000000e+00 : f32
    %22 = vector.broadcast %cst_15 : f32 to vector<1x256xf32>
    %c0_i32 = arith.constant 0 : i32
    %23 = vector.broadcast %c0_i32 : i32 to vector<1x256xi32>
    %24 = vector.extract_strided_slice %17 {offsets = [0, 0], sizes = [1, 256], strides = [1, 1]} : vector<4x256xf32> to vector<1x256xf32>
    %25 = arith.addf %22, %24 : vector<1x256xf32>
    %26 = arith.cmpf oge, %21, %25 : vector<1x256xf32>
    %27 = arith.extui %26 : vector<1x256xi1> to vector<1x256xi32>
    %28 = arith.addi %23, %27 : vector<1x256xi32>
    %29 = vector.extract_strided_slice %17 {offsets = [1, 0], sizes = [1, 256], strides = [1, 1]} : vector<4x256xf32> to vector<1x256xf32>
    %30 = arith.addf %25, %29 : vector<1x256xf32>
    %31 = arith.cmpf oge, %21, %30 : vector<1x256xf32>
    %32 = arith.extui %31 : vector<1x256xi1> to vector<1x256xi32>
    %33 = arith.addi %28, %32 : vector<1x256xi32>
    %34 = vector.extract_strided_slice %17 {offsets = [2, 0], sizes = [1, 256], strides = [1, 1]} : vector<4x256xf32> to vector<1x256xf32>
    %35 = arith.addf %30, %34 : vector<1x256xf32>
    %36 = arith.cmpf oge, %21, %35 : vector<1x256xf32>
    %37 = arith.extui %36 : vector<1x256xi1> to vector<1x256xi32>
    %38 = arith.addi %33, %37 : vector<1x256xi32>
    %39 = vector.extract_strided_slice %17 {offsets = [3, 0], sizes = [1, 256], strides = [1, 1]} : vector<4x256xf32> to vector<1x256xf32>
    %40 = arith.addf %35, %39 : vector<1x256xf32>
    %41 = arith.cmpf oge, %21, %40 : vector<1x256xf32>
    %42 = arith.extui %41 : vector<1x256xi1> to vector<1x256xi32>
    %43 = arith.addi %38, %42 : vector<1x256xi32>
    %c3_i32 = arith.constant 3 : i32
    %44 = vector.broadcast %c3_i32 : i32 to vector<1x256xi32>
    %45 = arith.minsi %43, %44 : vector<1x256xi32>
    %46 = tpu.iota {dimensions = array<i32: 0>} : vector<4x256xi32>
    %47 = vector.broadcast %45 : vector<1x256xi32> to vector<4x256xi32>
    %48 = arith.cmpi eq, %46, %47 : vector<4x256xi32>
    %cst_16 = arith.constant 0.000000e+00 : f32
    %49 = vector.broadcast %cst_16 : f32 to vector<4x256xf32>
    %50 = arith.select %48, %16, %49 : vector<4x256xi1>, vector<4x256xf32>
    %cst_17 = arith.constant dense<0.000000e+00> : vector<256xf32>
    %51 = vector.multi_reduction <add>, %50, %cst_17 [0] : vector<4x256xf32> to vector<256xf32>
    %52 = vector.shape_cast %51 : vector<256xf32> to vector<1x256xf32>
    %53 = math.log %19 : vector<1x256xf32>
    %54 = arith.subf %52, %53 : vector<1x256xf32>
    %c0_18 = arith.constant 0 : index
    %c0_19 = arith.constant 0 : index
    %55 = vector.load %arg7[%c0_18, %c0_19] : memref<1x256xi32, #tpu.memory_space<vmem>>, vector<1x256xi32>
    tpu.vector_store %arg7[%c0_18, %c0_19], %45 {strides = array<i32>} : memref<1x256xi32, #tpu.memory_space<vmem>>, vector<1x256xi32>,
    %c0_20 = arith.constant 0 : index
    %c0_21 = arith.constant 0 : index
    %56 = vector.load %arg8[%c0_20, %c0_21] : memref<1x256xf32, #tpu.memory_space<vmem>>, vector<1x256xf32>
    tpu.vector_store %arg8[%c0_20, %c0_21], %54 {strides = array<i32>} : memref<1x256xf32, #tpu.memory_space<vmem>>, vector<1x256xf32>,
    return
  }
  func.func @transform_0(%arg0: i32) -> (i32, i32) {
    %c0_i32 = arith.constant 0 : i32
    %c0_i32_0 = arith.constant 0 : i32
    return %arg0, %c0_i32 : i32, i32
  }
  func.func @transform_1(%arg0: i32) -> (i32, i32) {
    %c0_i32 = arith.constant 0 : i32
    %c0_i32_0 = arith.constant 0 : i32
    return %c0_i32, %arg0 : i32, i32
  }
  func.func @transform_2(%arg0: i32) -> (i32, i32) {
    %c0_i32 = arith.constant 0 : i32
    %c0_i32_0 = arith.constant 0 : i32
    %c0_i32_1 = arith.constant 0 : i32
    return %c0_i32, %c0_i32_0 : i32, i32
  }
  func.func @transform_3(%arg0: i32) -> (i32, i32) {
    %c0_i32 = arith.constant 0 : i32
    %c0_i32_0 = arith.constant 0 : i32
    %c0_i32_1 = arith.constant 0 : i32
    return %c0_i32, %c0_i32_0 : i32, i32
  }
  func.func @transform_4(%arg0: i32) -> (i32, i32) {
    %c0_i32 = arith.constant 0 : i32
    %c0_i32_0 = arith.constant 0 : i32
    %c0_i32_1 = arith.constant 0 : i32
    return %c0_i32, %c0_i32_0 : i32, i32
  }
  func.func @transform_5(%arg0: i32) -> (i32, i32) {
    %c0_i32 = arith.constant 0 : i32
    %c0_i32_0 = arith.constant 0 : i32
    %c0_i32_1 = arith.constant 0 : i32
    return %c0_i32, %c0_i32_0 : i32, i32
  }
  func.func @transform_6(%arg0: i32) -> (i32, i32) {
    %c0_i32 = arith.constant 0 : i32
    %c0_i32_0 = arith.constant 0 : i32
    return %c0_i32, %arg0 : i32, i32
  }
  func.func @transform_7(%arg0: i32) -> (i32, i32) {
    %c0_i32 = arith.constant 0 : i32
    %c0_i32_0 = arith.constant 0 : i32
    return %c0_i32, %arg0 : i32, i32
  }
}

</mosaic_0001>

<bundles_post_ra>
// kernel: tpu_custom_call.1
= control target key start
LH: loop header
LB: loop body
LE: loop exit
PB: predicated region body
PF: predicated region fallthrough
CT: control target
= control target key end

     0   :  { %13 = vsyncpa [#allocation3], 0  ;;  %vm87_vm0 = vcmask 130048   ;;  %s843_s0 = inlined_call_operand.vmem [shape: f32[256,16], index: 0, kind: input, shape index: {}]   ;;  %s844_s1 = inlined_call_operand.vmem [shape: f32[1,256], index: 1, kind: input, shape index: {}]   ;;  %s845_s2 = inlined_call_operand.vmem [shape: f32[32,16], index: 2, kind: input, shape index: {}]   ;;  %s846_s3 = inlined_call_operand.vmem [shape: f32[32,1], index: 3, kind: input, shape index: {}]   ;;  %s847_s4 = inlined_call_operand.vmem [shape: f32[4,32], index: 4, kind: input, shape index: {}]   ;;  %s848_s5 = inlined_call_operand.vmem [shape: f32[4,1], index: 5, kind: input, shape index: {}]   ;;  %s849_s6 = inlined_call_operand.hbm [shape: s32[1,256], index: 6, kind: output, shape index: {0}]   ;;  %s850_s7 = inlined_call_operand.hbm [shape: f32[1,256], index: 7, kind: output, shape index: {1}]  }
   0x1   :  { %v46_v0 = vld [vmem:[%s843_s0 + $0x78] sm:$0xff]  ;;  %v45_v2 = vld [vmem:[%s843_s0 + $0x70] sm:$0xff]  ;;  %v44_v4 = vld [vmem:[%s843_s0 + $0x68] sm:$0xff] }
   0x2   :  { %v62_v1 = vld [vmem:[%s843_s0 + $0xf8] sm:$0xff]  ;;  %482 = vmatpush.xpose.msk.msra.mxu0 %vm87_vm0, %v46_v0  ;;  %v61_v3 = vld [vmem:[%s843_s0 + $0xf0] sm:$0xff]  ;;  %v60_v5 = vld [vmem:[%s843_s0 + $0xe8] sm:$0xff] }
   0x3   :  { %502 = vmatpush.xpose.msk.msra.mxu1 %vm87_vm0, %v62_v1 }
   0x6   :  { %483 = vmatpush.xpose.msk.msra.mxu0 %vm87_vm0, %v45_v2 }
   0x7   :  { %503 = vmatpush.xpose.msk.msra.mxu1 %vm87_vm0, %v61_v3 }
   0x8   :  { %14 = vsyncpa [#allocation5], 0  ;;  %v43_v6 = vld [vmem:[%s843_s0 + $0x60] sm:$0xff]  ;;  %v42_v8 = vld [vmem:[%s843_s0 + $0x58] sm:$0xff]  ;;  %v590_v21 = vmov 0   ;;  %vm269_vm1 = vcmask 261120  }
   0x9   :  { %v59_v7 = vld [vmem:[%s843_s0 + $0xe0] sm:$0xff]  ;;  %v58_v9 = vld [vmem:[%s843_s0 + $0xd8] sm:$0xff]  ;;  %v41_v10 = vld [vmem:[%s843_s0 + $0x50] sm:$0xff]  ;;  %528 = vset.pattern.permute.xlu1 %v590_v21  ;;  %527 = vset.pattern.permute.xlu0 %v590_v21  ;;  %vm313_vm2 = vcmask 1043456   ;;  %vm352_vm3 = vcmask 1040384   ;;  %s457_s16 = sshll.u32 %s849_s6, 4  ;;  %s458_s16 = int_to_ptr.hbm [resolvable:$true] %s457_s16 }
   0xa   :  { %484 = vmatpush.xpose.msk.msra.mxu0 %vm87_vm0, %v44_v4  ;;  %v57_v11 = vld [vmem:[%s843_s0 + $0xd0] sm:$0xff]  ;;  %v40_v12 = vld [vmem:[%s843_s0 + $0x48] sm:$0xff]  ;;  %v39_v14 = vld [vmem:[%s843_s0 + $0x40] sm:$0xff]  ;;  %529 = vset.pattern.permute.xlu2 %v590_v21  ;;  %s592_s6 = smov [#allocation4]   ;;  %s468_s20 = sshll.u32 %s850_s7, 4  ;;  %s469_s20 = int_to_ptr.hbm [resolvable:$true] %s468_s20 }
   0xb   :  { %504 = vmatpush.xpose.msk.msra.mxu1 %vm87_vm0, %v60_v5  ;;  %v56_v13 = vld [vmem:[%s843_s0 + $0xc8] sm:$0xff]  ;;  %v55_v15 = vld [vmem:[%s843_s0 + $0xc0] sm:$0xff]  ;;  %v38_v16 = vld [vmem:[%s843_s0 + $0x38] sm:$0xff]  ;;  %s466_s17 = sshll.u32 %s592_s6, 4  ;;  %s467_s17 = int_to_ptr.vmem [resolvable:$true] %s466_s17 }
   0xc   :  { %v54_v17 = vld [vmem:[%s843_s0 + $0xb8] sm:$0xff]  ;;  %v64_v18 = vld [vmem:[%s846_s3 + $0x8] sm:$0xff]  ;;  %v37_v19 = vld [vmem:[%s843_s0 + $0x30] sm:$0xff] }
   0xd   :  { %v53_v20 = vld [vmem:[%s843_s0 + $0xb0] sm:$0xff]  ;;  %74 = vperm.xlu1 %528, %v64_v18   ;;  %v36_v22 = vld [vmem:[%s843_s0 + $0x28] sm:$0xff]  ;;  %v63_v24 = vld [vmem:[%s846_s3] sm:$0xff] }
   0xe   :  { %485 = vmatpush.xpose.msk.msra.mxu0 %vm87_vm0, %v43_v6  ;;  %v52_v23 = vld [vmem:[%s843_s0 + $0xa8] sm:$0xff]  ;;  %v35_v25 = vld [vmem:[%s843_s0 + $0x20] sm:$0xff]  ;;  %v34_v27 = vld [vmem:[%s843_s0 + $0x18] sm:$0xff] }
   0xf   :  { %505 = vmatpush.xpose.msk.msra.mxu1 %vm87_vm0, %v59_v7  ;;  %v51_v26 = vld [vmem:[%s843_s0 + $0xa0] sm:$0xff]  ;;  %v50_v28 = vld [vmem:[%s843_s0 + $0x98] sm:$0xff]  ;;  %v33_v30 = vld [vmem:[%s843_s0 + $0x10] sm:$0xff] }
  0x10   :  { %v66_v29 = vld [vmem:[%s846_s3 + $0x18] sm:$0xff]  ;;  %v49_v31 = vld [vmem:[%s843_s0 + $0x90] sm:$0xff]  ;;  %v32_v32 = vld [vmem:[%s843_s0 + $0x8] sm:$0xff] }
  0x11   :  { %84 = vperm.xlu0 %527, %v66_v29   ;;  %v48_v33 = vld [vmem:[%s843_s0 + $0x88] sm:$0xff]  ;;  %v65_v34 = vld [vmem:[%s846_s3 + $0x10] sm:$0xff]  ;;  %v31_v35 = vld [vmem:[%s843_s0] sm:$0xff] }
  0x12   :  { %486 = vmatpush.xpose.msk.msra.mxu0 %vm87_vm0, %v42_v8  ;;  %v47_v36 = vld [vmem:[%s843_s0 + $0x80] sm:$0xff]  ;;  %v28_v38 = vld [vmem:[%s845_s2 + $0x8] sm:$0xff]  ;;  %v29_v39 = vld [vmem:[%s845_s2 + $0x10] sm:$0xff] }
  0x13   :  { %506 = vmatpush.xpose.msk.msra.mxu1 %vm87_vm0, %v58_v9  ;;  %v27_v37 = vld [vmem:[%s845_s2] sm:$0xff]  ;;  %v30_v40 = vld [vmem:[%s845_s2 + $0x18] sm:$0xff] }
  0x14   :  { %v263_v43 = vld [vmem:[%s848_s5] sm:$0xf] }
  0x15   :  { %69 = vperm.xlu1 %528, %v63_v24   ;;  %266 = vperm.xlu2 %529, %v263_v43   ;;  %v262_v6 = vld [vmem:[%s847_s4] sm:$0xf] }
  0x16   :  { %487 = vmatpush.xpose.msk.msra.mxu0 %vm87_vm0, %v41_v10 }
  0x17   :  { %507 = vmatpush.xpose.msk.msra.mxu1 %vm87_vm0, %v57_v11 }
  0x19   :  { %79 = vperm.xlu0 %527, %v65_v34  }
  0x1a   :  { %488 = vmatpush.xpose.msk.msra.mxu0 %vm87_vm0, %v40_v12 }
  0x1b   :  { %508 = vmatpush.xpose.msk.msra.mxu1 %vm87_vm0, %v56_v13 }
  0x1e   :  { %489 = vmatpush.xpose.msk.msra.mxu0 %vm87_vm0, %v39_v14 }
  0x1f   :  { %509 = vmatpush.xpose.msk.msra.mxu1 %vm87_vm0, %v55_v15 }
  0x22   :  { %490 = vmatpush.xpose.msk.msra.mxu0 %vm87_vm0, %v38_v16 }
  0x23   :  { %510 = vmatpush.xpose.msk.msra.mxu1 %vm87_vm0, %v54_v17 }
  0x26   :  { %491 = vmatpush.xpose.msk.msra.mxu0 %vm87_vm0, %v37_v19 }
  0x27   :  { %511 = vmatpush.xpose.msk.msra.mxu1 %vm87_vm0, %v53_v20 }
  0x2a   :  { %492 = vmatpush.xpose.msk.msra.mxu0 %vm87_vm0, %v36_v22 }
  0x2b   :  { %512 = vmatpush.xpose.msk.msra.mxu1 %vm87_vm0, %v52_v23 }
  0x2e   :  { %493 = vmatpush.xpose.msk.msra.mxu0 %vm87_vm0, %v35_v25 }
  0x2f   :  { %513 = vmatpush.xpose.msk.msra.mxu1 %vm87_vm0, %v51_v26 }
  0x32   :  { %494 = vmatpush.xpose.msk.msra.mxu0 %vm87_vm0, %v34_v27 }
  0x33   :  { %514 = vmatpush.xpose.msk.msra.mxu1 %vm87_vm0, %v50_v28 }
  0x36   :  { %495 = vmatpush.xpose.msk.msra.mxu0 %vm87_vm0, %v33_v30 }
  0x37   :  { %515 = vmatpush.xpose.msk.msra.mxu1 %vm87_vm0, %v49_v31 }
  0x3a   :  { %496 = vmatpush.xpose.msk.msra.mxu0 %vm87_vm0, %v32_v32 }
  0x3b   :  { %516 = vmatpush.xpose.msk.msra.mxu1 %vm87_vm0, %v48_v33 }
  0x3e   :  { %497 = vmatpush.xpose.msk.msra.mxu0 %vm87_vm0, %v31_v35 }
  0x3f   :  { %517 = vmatpush.xpose.msk.msra.mxu1 %vm87_vm0, %v47_v36 }
  0x41   :  { %498 = vmatmul.msk.f32.vlgmr.msra.gmra.mxu0 %vm87_vm0, %v27_v37 }
  0x42   :  { %518 = vmatmul.msk.f32.vlgmr.msra.gmra.mxu1 %vm87_vm0, %v27_v37 }
  0x49   :  { %499 = vmatmul.msk.f32.gmra.mxu0 %vm87_vm0, %v28_v38 }
  0x4a   :  { %519 = vmatmul.msk.f32.gmra.mxu1 %vm87_vm0, %v28_v38 }
  0x51   :  { %500 = vmatmul.msk.f32.gmra.mxu0 %vm87_vm0, %v29_v39 }
  0x52   :  { %520 = vmatmul.msk.f32.gmra.mxu1 %vm87_vm0, %v29_v39 }
  0x59   :  { %501 = vmatmul.msk.f32.gmra.mxu0 %vm87_vm0, %v30_v40 }
  0x5a   :  { %521 = vmatmul.msk.f32.gmra.mxu1 %vm87_vm0, %v30_v40 }
  0x6f   :  { %v267_v7 = vpop.permute.xlu2 %266 }
  0x7f   :  { %v75_v47 = vpop.permute.xlu1 %74 }
  0x83   :  { %v85_v46 = vpop.permute.xlu0 %84 }
  0x87   :  { %v70_v57 = vpop.permute.xlu1 %69 }
  0x8b   :  { %v80_v50 = vpop.permute.xlu0 %79 }
  0xbe   :  { %v213_v41 = vpop.f32.mrf.mxu0 }
  0xbf   :  { %v242_v42 = vpop.f32.mrf.mxu1  ;;  %v214_v62 = vadd.f32 %v213_v41, %v70_v57 }
  0xc0   :  { %v243_v63 = vadd.f32 %v242_v42, %v70_v57 }
  0xc1   :  { %v254_v4 = vmax.f32 %v214_v62, 0.0 }
  0xc2   :  { %v255_v5 = vmax.f32 %v243_v63, 0.0 }
  0xc6   :  { %v216_v44 = vpop.f32.mrf.mxu0 }
  0xc7   :  { %v245_v45 = vpop.f32.mrf.mxu1  ;;  %v217_v58 = vadd.f32 %v216_v44, %v75_v47 }
  0xc8   :  { %v246_v59 = vadd.f32 %v245_v45, %v75_v47 }
  0xc9   :  { %v256_v2 = vmax.f32 %v217_v58, 0.0  ;;  %v348_v58 = vld [vmem:[%s844_s1] sm:$0x3]  ;;  %s591_s1 = smov [#allocation2]  }
  0xca   :  { %v257_v3 = vmax.f32 %v246_v59, 0.0  ;;  %s455_s13 = sshll.u32 %s591_s1, 4  ;;  %s456_s13 = int_to_ptr.vmem [resolvable:$true] %s455_s13 }
  0xce   :  { %v219_v48 = vpop.f32.mrf.mxu0 }
  0xcf   :  { %v248_v49 = vpop.f32.mrf.mxu1  ;;  %v220_v53 = vadd.f32 %v219_v48, %v80_v50 }
  0xd0   :  { %v249_v54 = vadd.f32 %v248_v49, %v80_v50 }
  0xd1   :  { %v258_v0 = vmax.f32 %v220_v53, 0.0 }
  0xd2   :  { %v259_v1 = vmax.f32 %v249_v54, 0.0 }
  0xd6   :  { %v222_v51 = vpop.f32.mrf.mxu0 }
  0xd7   :  { %v251_v52 = vpop.f32.mrf.mxu1  ;;  %v223_v55 = vadd.f32 %v222_v51, %v85_v46 }
  0xd8   :  { %v252_v56 = vadd.f32 %v251_v52, %v85_v46 }
  0xd9   :  { %v260_v60 = vmax.f32 %v223_v55, 0.0 }
  0xda   :  { %v261_v61 = vmax.f32 %v252_v56, 0.0 }
  0xdb   :  { %285 = vmatpush.msra.mxu2 %v260_v60 }
  0xdc   :  { %305 = vmatpush.msra.mxu3 %v261_v61 }
  0xdd   :  { %286 = vmatpush.msra.mxu2 %v258_v0 }
  0xde   :  { %306 = vmatpush.msra.mxu3 %v259_v1 }
  0xdf   :  { %287 = vmatpush.msra.mxu2 %v256_v2 }
  0xe0   :  { %307 = vmatpush.msra.mxu3 %v257_v3 }
  0xe1   :  { %288 = vmatpush.msra.mxu2 %v254_v4 }
  0xe2   :  { %308 = vmatpush.msra.mxu3 %v255_v5  ;;  %522 = vmatmul.msk.f32.vlgmr.msra.gmra.mxu2 %vm269_vm1, %v262_v6 }
  0xe3   :  { %523 = vmatmul.msk.f32.vlgmr.msra.gmra.mxu3 %vm269_vm1, %v262_v6 }
 0x165   :  { %v290_v8 = vpop.f32.mrf.mxu2 }
 0x166   :  { %v310_v9 = vpop.f32.mrf.mxu3  ;;  %v291_v10 = vadd.f32 %v290_v8, %v267_v7 }
 0x167   :  { %v311_v11 = vadd.f32 %v310_v9, %v267_v7 }
 0x168   :  { %v314_v12 = vsel %vm313_vm2, %v291_v10, -inf }
 0x169   :  { %v321_v13 = vsel %vm313_vm2, %v311_v11, -inf  ;;  %v315_v14 = vrot.slane %v314_v12, 4 }
 0x16a   :  { %v322_v15 = vrot.slane %v321_v13, 4 }
 0x16b   :  { %v316_v16 = vmax.f32 %v314_v12, %v315_v14 }
 0x16c   :  { %v323_v17 = vmax.f32 %v321_v13, %v322_v15 }
 0x16d   :  { %v317_v18 = vrot.slane %v316_v16, 2 }
 0x16e   :  { %v324_v19 = vrot.slane %v323_v17, 2 }
 0x16f   :  { %v318_v20 = vmax.f32 %v316_v16, %v317_v18 }
 0x170   :  { %v325_v22 = vmax.f32 %v323_v17, %v324_v19 }
 0x171   :  { %v319_v23 = vrot.slane %v318_v20, 1 }
 0x172   :  { %v326_v24 = vrot.slane %v325_v22, 1 }
 0x173   :  { %v320_v25 = vmax.f32 %v318_v20, %v319_v23 }
 0x174   :  { %v327_v26 = vmax.f32 %v325_v22, %v326_v24 }
 0x175   :  { %v804_v27 = vsub.f32 %v291_v10, %v320_v25 }
 0x176   :  { %v806_v28 = vsub.f32 %v311_v11, %v327_v26  ;;  %v411_v11 = vlaneseq }
 0x177   :  { %v330_v29 = vmul.f32 1.442695, %v804_v27 }
 0x178   :  { %v332_v30 = vmul.f32 1.442695, %v806_v28  ;;  %vm827_vm8 = vcmp.lt.s32.totalorder %v411_v11, 256  ;;  %v412_v16 = vshrl.u32 %v411_v11, 7 }
 0x179   :  { %530 = vpow2.f32 %v330_v29 }
 0x17a   :  { %532 = vpow2.f32 %v332_v30 }
 0x17f   :  { %v531_v31 = vpop.eup %530 }
 0x180   :  { %v533_v32 = vpop.eup %532  ;;  %v334_v33 = vsel %vm313_vm2, %v531_v31, 0.0  ;;  %v367_v42 = vrot.slane %v531_v31, 1  ;;  %v381_v52 = vrot.slane %v531_v31, 2  ;;  %v395_v63 = vrot.slane %v531_v31, 3 }
 0x181   :  { %v335_v34 = vrot.slane %v334_v33, 4  ;;  %v341_v35 = vsel %vm313_vm2, %v533_v32, 0.0  ;;  %v368_v36 = vrot.slane %v533_v32, 1  ;;  %v382_v44 = vrot.slane %v533_v32, 2 }
 0x182   :  { %v342_v37 = vrot.slane %v341_v35, 4  ;;  %v371_v48 = vadd.f32 %v531_v31, %v367_v42  ;;  %v396_v51 = vrot.slane %v533_v32, 3  ;;  %v360_v55 = vrot.slane %v533_v32, 7 }
 0x183   :  { %v336_v38 = vadd.f32 %v335_v34, %v334_v33  ;;  %v372_v40 = vadd.f32 %v533_v32, %v368_v36 }
 0x184   :  { %v343_v39 = vadd.f32 %v342_v37, %v341_v35  ;;  %v385_v56 = vadd.f32 %v381_v52, %v371_v48  ;;  %v361_v2 = vsel %vm352_vm3, %v531_v31, %v360_v55 }
 0x185   :  { %v337_v41 = vrot.slane %v336_v38, 2  ;;  %v386_v47 = vadd.f32 %v382_v44, %v372_v40  ;;  %v375_v60 = vrot.slane %v372_v40, 7 }
 0x186   :  { %v344_v43 = vrot.slane %v343_v39, 2  ;;  %v399_v5 = vadd.f32 %v395_v63, %v385_v56 }
 0x187   :  { %v338_v45 = vadd.f32 %v337_v41, %v336_v38  ;;  %v400_v54 = vadd.f32 %v396_v51, %v386_v47  ;;  %v389_v61 = vrot.slane %v386_v47, 7  ;;  %v376_v3 = vsel %vm352_vm3, %v371_v48, %v375_v60 }
 0x188   :  { %v345_v46 = vadd.f32 %v344_v43, %v343_v39 }
 0x189   :  { %v339_v49 = vrot.slane %v338_v45, 1  ;;  %v403_v0 = vrot.slane %v400_v54, 7  ;;  %v390_v4 = vsel %vm352_vm3, %v385_v56, %v389_v61 }
 0x18a   :  { %v346_v50 = vrot.slane %v345_v46, 1 }
 0x18b   :  { %v340_v57 = vadd.f32 %v339_v49, %v338_v45  ;;  %v404_v8 = vsel %vm352_vm3, %v399_v5, %v403_v0 }
 0x18c   :  { %v347_v53 = vadd.f32 %v346_v50, %v345_v46 }
 0x18e   :  { %v351_v59 = vrot.slane %v347_v53, 7  ;;  %534 = vlog2.f32 %v347_v53 }
 0x18f   :  { %536 = vlog2.f32 %v340_v57 }
 0x190   :  { %v353_v62 = vsel %vm352_vm3, %v340_v57, %v351_v59 }
 0x191   :  { %v355_v1 = vmul.f32 %v353_v62, %v348_v58 }
 0x193   :  { %vm363_vm4 = vcmp.ge.f32.partialorder %v355_v1, %v361_v2  ;;  %vm378_vm5 = vcmp.ge.f32.partialorder %v355_v1, %v376_v3  ;;  %vm392_vm6 = vcmp.ge.f32.partialorder %v355_v1, %v390_v4  ;;  %vm406_vm7 = vcmp.ge.f32.partialorder %v355_v1, %v404_v8 }
 0x194   :  { %v364_v6 = vsel %vm363_vm4, 1, %v590_v21  ;;  %v379_v7 = vsel %vm378_vm5, 1, %v590_v21  ;;  %v393_v10 = vsel %vm392_vm6, 1, %v590_v21  ;;  %v407_v13 = vsel %vm406_vm7, 1, %v590_v21  ;;  %v535_v34 = vpop.eup %534 }
 0x195   :  { %v380_v9 = vadd.s32 %v379_v7, %v364_v6  ;;  %v436_v38 = vmul.f32 0.6931472, %v535_v34 }
 0x197   :  { %v394_v12 = vadd.s32 %v393_v10, %v380_v9 }
 0x199   :  { %v408_v14 = vadd.s32 %v407_v13, %v394_v12 }
 0x19b   :  { %vm409_vm9 = vcmp.lt.s32.totalorder %v408_v14, 3 }
 0x19c   :  { %v410_v17 = vsel %vm409_vm9, %v408_v14, 3 }
 0x19d   :  { %v413_v18 = vperm.slane %v410_v17, 0  ;;  %v414_v19 = vperm.slane %v410_v17, 1  ;;  %443 = vst.msk [vmem:[#allocation2] sm:$0x3] %vm827_vm8, %v410_v17 }
 0x19e   :  { %460 = dma.vmem_to_hbm [thread:$0]  %s456_s13, 32, %s458_s16, [#allocation3]  }
 0x19f   :  { %vm415_vm10 = vcmp.eq.s32.totalorder %v412_v16, %v413_v18  ;;  %vm416_vm11 = vcmp.eq.s32.totalorder %v412_v16, %v414_v19 }
 0x1a0   :  { %v417_v21 = vsel %vm415_vm10, %v804_v27, 0.0  ;;  %v418_v20 = vsel %vm416_vm11, %v806_v28, 0.0  ;;  %v537_v27 = vpop.eup %536 }
 0x1a1   :  { %v419_v22 = vsel %vm313_vm2, %v417_v21, 0.0  ;;  %v426_v23 = vsel %vm313_vm2, %v418_v20, 0.0  ;;  %v434_v39 = vmul.f32 0.6931472, %v537_v27 }
 0x1a2   :  { %v420_v24 = vrot.slane %v419_v22, 4  ;;  %v427_v25 = vrot.slane %v426_v23, 4 }
 0x1a4   :  { %v421_v26 = vadd.f32 %v420_v24, %v419_v22  ;;  %v428_v29 = vadd.f32 %v427_v25, %v426_v23 }
 0x1a6   :  { %v422_v30 = vrot.slane %v421_v26, 2  ;;  %v429_v31 = vrot.slane %v428_v29, 2 }
 0x1a8   :  { %v430_v32 = vadd.f32 %v429_v31, %v428_v29  ;;  %v423_v33 = vadd.f32 %v422_v30, %v421_v26 }
 0x1aa   :  { %v424_v35 = vrot.slane %v423_v33, 1  ;;  %v431_v36 = vrot.slane %v430_v32, 1 }
 0x1ac   :  { %v425_v37 = vadd.f32 %v424_v35, %v423_v33  ;;  %v432_v28 = vadd.f32 %v431_v36, %v430_v32 }
 0x1ae   :  { %v438_v40 = vsub.f32 %v432_v28, %v436_v38  ;;  %v437_v41 = vsub.f32 %v425_v37, %v434_v39 }
 0x1b0   :  { %v446_v42 = vrot.slane %v438_v40, 7 }
 0x1b2   :  { %v447_v43 = vsel %vm352_vm3, %v437_v41, %v446_v42 }
 0x1b3   :  { %449 = vst.msk [vmem:[#allocation4] sm:$0x3] %vm827_vm8, %v447_v43 }
 0x1b4   :  { %471 = dma.vmem_to_hbm [thread:$0]  %s467_s17, 32, %s469_s20, [#allocation5]  }
 0x1b5   :  { %586 = dma.done.wait [#allocation3], 32  }
 0x1b6   :  { %587 = vsyncadd [#allocation3], 4294967264 }
 0x1b7   :  { %588 = dma.done.wait [#allocation5], 32  }
 0x1b8   :  { %589 = vsyncadd [#allocation5], 4294967264 }
 0x1b9   :  { %480 = vsyncpa [#allocation3], 1 }
 0x1ba   :  { %481 = vsyncpa [#allocation5], 1 }

</bundles_post_ra>
